<compile_context>
chip_gen: v5e
topology: v5e:2x2
jax: 0.10.0
libtpu: 0.0.40
codegen_flags: <defaults>
</compile_context>

<pallas_src>
import jax
import jax.numpy as jnp
import numpy as np
from jax.experimental import pallas as pl
from jax.experimental.pallas import tpu as pltpu


_TB = 128    # batch rows gathered per grid step
_POOL = 16   # shared DMA-semaphore pool size (sem slot = row % _POOL)


# ----------------------------- Pallas kernel --------------------------------

def _make_gather_kernel(batch_size):
    """Row-gather kernel: out[row] = table[idx] if idx >= 0 else empty_row."""

    def kernel(eff_ids_ref, table_hbm, empty_hbm, out_hbm, sems):
        # eff_ids_ref: (B,) int32 in SMEM (scalar prefetch); -1 marks a drop
        # table_hbm  : (V, D) embedding table, left in HBM
        # empty_hbm  : (1, D) empty-context row, left in HBM
        # out_hbm    : (B, D) output, left in HBM (written only via DMA)
        # sems       : (_POOL,) shared DMA completion semaphores
        base = pl.program_id(0) * _TB
        n = jnp.minimum(_TB, batch_size - base)   # rows handled by this step

        def for_each_row(fn):
            # Same descriptor construction for the issue and the drain pass so
            # start/wait transfer sizes and semaphore slots match exactly.
            @pl.loop(0, n)
            def _(r):
                row = base + r
                idx = eff_ids_ref[row]                 # scalar read from SMEM
                dst = out_hbm.at[pl.ds(row, 1), :]
                sem = sems.at[r % _POOL]

                @pl.when(idx >= 0)                     # normal row: gather
                def _():
                    fn(pltpu.make_async_copy(
                        table_hbm.at[pl.ds(idx, 1), :], dst, sem))

                @pl.when(idx < 0)                      # dropped row: empty ctx
                def _():
                    fn(pltpu.make_async_copy(empty_hbm, dst, sem))

        for_each_row(lambda cp: cp.start())   # issue: all row DMAs in flight
        for_each_row(lambda cp: cp.wait())    # drain: one wait per started copy

    return kernel


def context_drop_pallas(eff_ids, table, empty_row):
    """Gather rows from `table` (or `empty_row` where eff_ids == -1) into (B, D)."""
    B = int(eff_ids.shape[0])
    V, D = table.shape
    assert D % 128 == 0, "context_dim must be a multiple of 128 (lane-dense rows)"
    assert empty_row.shape == (1, D)

    eff_ids = eff_ids.astype(jnp.int32)
    empty_row = empty_row.astype(table.dtype)

    grid_spec = pltpu.PrefetchScalarGridSpec(
        num_scalar_prefetch=1,                          # eff_ids -> SMEM
        grid=(pl.cdiv(B, _TB),),
        in_specs=[pl.BlockSpec(memory_space=pl.ANY),    # table stays in HBM
                  pl.BlockSpec(memory_space=pl.ANY)],   # empty row stays in HBM
        out_specs=pl.BlockSpec(memory_space=pl.ANY),    # direct HBM -> HBM gather
        scratch_shapes=[pltpu.SemaphoreType.DMA((_POOL,))],
    )

    return pl.pallas_call(
        _make_gather_kernel(B),
        out_shape=jax.ShapeDtypeStruct((B, D), table.dtype),
        grid_spec=grid_spec,
        compiler_params=pltpu.CompilerParams(
            dimension_semantics=("parallel",)),         # independent rows; v7x 2-TC
    )(eff_ids, table, empty_row)


# ----------------------------- Module wrapper --------------------------------

class Tokenizer:
    """Stand-in tokenizer: get_embeddding(ids) == embedding-table lookup."""

    def __init__(self, vocab_size, context_dim, key):
        self.table = jax.random.normal(key, (vocab_size, context_dim),
                                       dtype=jnp.float32)

    def get_embeddding(self, ids):
        return self.table[ids]


class ContextDropPallas:
    def __init__(self, cfg_prob=0.0, context_dim=512):
        self.context_dim = context_dim
        self.cfg_prob = cfg_prob
        if cfg_prob > 0:
            # matches nn.Parameter(torch.zeros(context_dim)) init
            self.empty_context = jnp.zeros((context_dim,), jnp.float32)

    def _empty(self):
        # PyTorch only defines empty_context when cfg_prob > 0; fall back to
        # zeros instead of raising so the no-cfg path can't crash.
        return getattr(self, "empty_context",
                       jnp.zeros((self.context_dim,), jnp.float32))

    def __call__(self, context, train, batch_size, tokenizer, use_cfg=False,
                 rng=None):
        if context is None:
            # force_drop path: empty_context.repeat(B, 1) -> (B, D); pure
            # parameter tiling, no hot path -> leave to XLA.
            return jnp.tile(self._empty()[None, :], (batch_size, 1))

        table = tokenizer.table
        V = table.shape[0]
        # Clip guards the DMA engine against out-of-range ids.
        # TODO(synk): add a debug assertion path instead of silently clipping.
        ids = jnp.clip(context.astype(jnp.int32), 0, V - 1)
        if use_cfg:
            drop = jax.random.uniform(rng, (batch_size,)) < self.cfg_prob
            eff_ids = jnp.where(drop, jnp.int32(-1), ids)   # -1 == dropped row
        else:
            eff_ids = ids

        empty_row = self._empty().astype(table.dtype)[None, :]   # (1, D)
        out = context_drop_pallas(eff_ids, table, empty_row)     # (B, D)
        return out[:, None, :]                                   # unsqueeze(1): free reshape


# ----------------------------- Reference + main -------------------------------

def _reference(ids, drop_mask, table, empty_context):
    emb = table[ids][:, None, :]                                 # (B, 1, D)
    return jnp.where(drop_mask[:, None, None],
                     empty_context[None, None, :], emb)


if __name__ == "__main__":
    key = jax.random.PRNGKey(0)
    k_tab, k_ids, k_drop, k_ids2, k_drop2 = jax.random.split(key, 5)

    vocab_size = 16
    context_dim = 128      # small, lane-aligned stand-in for 512

    tokenizer = Tokenizer(vocab_size, context_dim, k_tab)
    module = ContextDropPallas(cfg_prob=0.5, context_dim=context_dim)

    # use_cfg=True, small batch (single grid step, partial tile: n=8 < TB)
    B1 = 8
    ids1 = jax.random.randint(k_ids, (B1,), 0, vocab_size, dtype=jnp.int32)
    out1 = jax.block_until_ready(
        module(ids1, train=True, batch_size=B1, tokenizer=tokenizer,
               use_cfg=True, rng=k_drop))
    drop1 = jax.random.uniform(k_drop, (B1,)) < 0.5
    ref1 = _reference(ids1, drop1, tokenizer.table, module.empty_context)
    np.testing.assert_allclose(np.asarray(out1), np.asarray(ref1),
                               rtol=1e-6, atol=1e-6)

    # use_cfg=True, B=130: two grid steps, full step + partial tail (n=2)
    B2 = 130
    ids2 = jax.random.randint(k_ids2, (B2,), 0, vocab_size, dtype=jnp.int32)
    out2 = jax.block_until_ready(
        module(ids2, train=True, batch_size=B2, tokenizer=tokenizer,
               use_cfg=True, rng=k_drop2))
    drop2 = jax.random.uniform(k_drop2, (B2,)) < 0.5
    ref2 = _reference(ids2, drop2, tokenizer.table, module.empty_context)
    np.testing.assert_allclose(np.asarray(out2), np.asarray(ref2),
                               rtol=1e-6, atol=1e-6)

    # use_cfg=False path (plain gather, no drops)
    out3 = jax.block_until_ready(
        module(ids1, train=True, batch_size=B1, tokenizer=tokenizer,
               use_cfg=False))
    ref3 = tokenizer.table[ids1][:, None, :]
    np.testing.assert_allclose(np.asarray(out3), np.asarray(ref3),
                               rtol=1e-6, atol=1e-6)

    # force-drop path (context=None): parameter tiling -> (B, D)
    out4 = jax.block_until_ready(
        module(None, train=True, batch_size=B1, tokenizer=tokenizer))
    assert out4.shape == (B1, context_dim)
    np.testing.assert_allclose(np.asarray(out4),
                               np.zeros((B1, context_dim), np.float32))

    print("KERNEL_OK")
</pallas_src>

<mosaic_0001>
module attributes {stable_mosaic.version = 11 : i64} {
  func.func @kernel(%arg0: i32, %arg1: memref<8xi32, #tpu.memory_space<smem>>, %arg2: memref<16x128xf32, #tpu.memory_space<any>>, %arg3: memref<1x128xf32, #tpu.memory_space<any>>, %arg4: memref<8x128xf32, #tpu.memory_space<any>>, %arg5: memref<16x!tpu.dma_semaphore, #tpu.memory_space<semaphore_mem>>) attributes {dimension_semantics = [#tpu.dimension_semantics<parallel>], iteration_bounds = array<i64: 1>, scalar_prefetch = 1 : i64, scratch_operands = 1 : i64, tpu.core_type = #tpu.core_type<tc>, window_params = [{}, {}, {}]} {
    %c128_i32 = arith.constant 128 : i32
    %0 = arith.muli %arg0, %c128_i32 : i32
    %c8_i32 = arith.constant 8 : i32
    %1 = arith.subi %c8_i32, %0 : i32
    %c128_i32_0 = arith.constant 128 : i32
    %2 = arith.minsi %c128_i32_0, %1 : i32
    %c0_i32 = arith.constant 0 : i32
    %3 = arith.subi %2, %c0_i32 : i32
    %c1_i32 = arith.constant 1 : i32
    %c1_i32_1 = arith.constant 1 : i32
    %4 = arith.subi %c1_i32, %c1_i32_1 : i32
    %5 = arith.addi %3, %4 : i32
    %c1_i32_2 = arith.constant 1 : i32
    %6 = arith.divsi %5, %c1_i32_2 : i32
    %c1_i32_3 = arith.constant 1 : i32
    %c0_i32_4 = arith.constant 0 : i32
    %c0_i32_5 = arith.constant 0 : i32
    %7 = arith.subi %6, %c0_i32_5 : i32
    %8 = arith.addi %c0_i32_5, %7 : i32
    %c1_i32_6 = arith.constant 1 : i32
    scf.for %arg6 = %c0_i32_5 to %8 step %c1_i32_6  : i32 {
      %15 = arith.muli %arg6, %c1_i32_3 : i32
      %16 = arith.addi %c0_i32_4, %15 : i32
      %17 = arith.addi %0, %16 : i32
      %18 = arith.index_cast %17 : i32 to index
      %19 = memref.load %arg1[%18] : memref<8xi32, #tpu.memory_space<smem>>
      %c16_i32 = arith.constant 16 : i32
      %c0_i32_15 = arith.constant 0 : i32
      %20 = arith.cmpi eq, %c16_i32, %c0_i32_15 : i32
      %c1_i32_16 = arith.constant 1 : i32
      %21 = arith.select %20, %c1_i32_16, %c16_i32 : i32
      %22 = arith.remsi %16, %21 : i32
      %c0_i32_17 = arith.constant 0 : i32
      %23 = arith.cmpi ne, %22, %c0_i32_17 : i32
      %c0_i32_18 = arith.constant 0 : i32
      %24 = arith.cmpi slt, %22, %c0_i32_18 : i32
      %c0_i32_19 = arith.constant 0 : i32
      %25 = arith.cmpi slt, %21, %c0_i32_19 : i32
      %26 = arith.xori %24, %25 : i1
      %27 = arith.andi %26, %23 : i1
      %28 = arith.addi %22, %21 : i32
      %29 = arith.select %27, %28, %22 : i32
      %c0_i32_20 = arith.constant 0 : i32
      %30 = arith.cmpi sge, %19, %c0_i32_20 : i32
      %31 = arith.extui %30 : i1 to i32
      %c0_i32_21 = arith.constant 0 : i32
      %32 = arith.cmpi ne, %31, %c0_i32_21 : i32
      scf.if %32 {
        %c0_i32_24 = arith.constant 0 : i32
        %36 = tpu.memref_slice %arg2[%19, %c0_i32_24] : memref<16x128xf32, #tpu.memory_space<any>> -> memref<1x128xf32, #tpu.memory_space<any>>
        %c0_i32_25 = arith.constant 0 : i32
        %37 = tpu.memref_slice %arg4[%17, %c0_i32_25] : memref<8x128xf32, #tpu.memory_space<any>> -> memref<1x128xf32, #tpu.memory_space<any>>
        %38 = tpu.memref_slice %arg5[%29] : memref<16x!tpu.dma_semaphore, #tpu.memory_space<semaphore_mem>> -> memref<1x!tpu.dma_semaphore, #tpu.memory_space<semaphore_mem>>
        %39 = tpu.memref_squeeze %38 : memref<1x!tpu.dma_semaphore, #tpu.memory_space<semaphore_mem>> -> memref<!tpu.dma_semaphore, #tpu.memory_space<semaphore_mem>>
        tpu.enqueue_dma source(%36 : memref<1x128xf32, #tpu.memory_space<any>>) target(%37 : memref<1x128xf32, #tpu.memory_space<any>>) target_semaphore(%39 : memref<!tpu.dma_semaphore, #tpu.memory_space<semaphore_mem>>)
      } else {
      }
      %c0_i32_22 = arith.constant 0 : i32
      %33 = arith.cmpi slt, %19, %c0_i32_22 : i32
      %34 = arith.extui %33 : i1 to i32
      %c0_i32_23 = arith.constant 0 : i32
      %35 = arith.cmpi ne, %34, %c0_i32_23 : i32
      scf.if %35 {
        %c0_i32_24 = arith.constant 0 : i32
        %36 = tpu.memref_slice %arg4[%17, %c0_i32_24] : memref<8x128xf32, #tpu.memory_space<any>> -> memref<1x128xf32, #tpu.memory_space<any>>
        %37 = tpu.memref_slice %arg5[%29] : memref<16x!tpu.dma_semaphore, #tpu.memory_space<semaphore_mem>> -> memref<1x!tpu.dma_semaphore, #tpu.memory_space<semaphore_mem>>
        %38 = tpu.memref_squeeze %37 : memref<1x!tpu.dma_semaphore, #tpu.memory_space<semaphore_mem>> -> memref<!tpu.dma_semaphore, #tpu.memory_space<semaphore_mem>>
        tpu.enqueue_dma source(%arg3 : memref<1x128xf32, #tpu.memory_space<any>>) target(%36 : memref<1x128xf32, #tpu.memory_space<any>>) target_semaphore(%38 : memref<!tpu.dma_semaphore, #tpu.memory_space<semaphore_mem>>)
      } else {
      }
    }
    %c0_i32_7 = arith.constant 0 : i32
    %9 = arith.subi %2, %c0_i32_7 : i32
    %c1_i32_8 = arith.constant 1 : i32
    %c1_i32_9 = arith.constant 1 : i32
    %10 = arith.subi %c1_i32_8, %c1_i32_9 : i32
    %11 = arith.addi %9, %10 : i32
    %c1_i32_10 = arith.constant 1 : i32
    %12 = arith.divsi %11, %c1_i32_10 : i32
    %c1_i32_11 = arith.constant 1 : i32
    %c0_i32_12 = arith.constant 0 : i32
    %c0_i32_13 = arith.constant 0 : i32
    %13 = arith.subi %12, %c0_i32_13 : i32
    %14 = arith.addi %c0_i32_13, %13 : i32
    %c1_i32_14 = arith.constant 1 : i32
    scf.for %arg6 = %c0_i32_13 to %14 step %c1_i32_14  : i32 {
      %15 = arith.muli %arg6, %c1_i32_11 : i32
      %16 = arith.addi %c0_i32_12, %15 : i32
      %17 = arith.addi %0, %16 : i32
      %18 = arith.index_cast %17 : i32 to index
      %19 = memref.load %arg1[%18] : memref<8xi32, #tpu.memory_space<smem>>
      %c16_i32 = arith.constant 16 : i32
      %c0_i32_15 = arith.constant 0 : i32
      %20 = arith.cmpi eq, %c16_i32, %c0_i32_15 : i32
      %c1_i32_16 = arith.constant 1 : i32
      %21 = arith.select %20, %c1_i32_16, %c16_i32 : i32
      %22 = arith.remsi %16, %21 : i32
      %c0_i32_17 = arith.constant 0 : i32
      %23 = arith.cmpi ne, %22, %c0_i32_17 : i32
      %c0_i32_18 = arith.constant 0 : i32
      %24 = arith.cmpi slt, %22, %c0_i32_18 : i32
      %c0_i32_19 = arith.constant 0 : i32
      %25 = arith.cmpi slt, %21, %c0_i32_19 : i32
      %26 = arith.xori %24, %25 : i1
      %27 = arith.andi %26, %23 : i1
      %28 = arith.addi %22, %21 : i32
      %29 = arith.select %27, %28, %22 : i32
      %c0_i32_20 = arith.constant 0 : i32
      %30 = arith.cmpi sge, %19, %c0_i32_20 : i32
      %31 = arith.extui %30 : i1 to i32
      %c0_i32_21 = arith.constant 0 : i32
      %32 = arith.cmpi ne, %31, %c0_i32_21 : i32
      scf.if %32 {
        %c0_i32_24 = arith.constant 0 : i32
        %36 = tpu.memref_slice %arg2[%19, %c0_i32_24] : memref<16x128xf32, #tpu.memory_space<any>> -> memref<1x128xf32, #tpu.memory_space<any>>
        %c0_i32_25 = arith.constant 0 : i32
        %37 = tpu.memref_slice %arg4[%17, %c0_i32_25] : memref<8x128xf32, #tpu.memory_space<any>> -> memref<1x128xf32, #tpu.memory_space<any>>
        %38 = tpu.memref_slice %arg5[%29] : memref<16x!tpu.dma_semaphore, #tpu.memory_space<semaphore_mem>> -> memref<1x!tpu.dma_semaphore, #tpu.memory_space<semaphore_mem>>
        %39 = tpu.memref_squeeze %38 : memref<1x!tpu.dma_semaphore, #tpu.memory_space<semaphore_mem>> -> memref<!tpu.dma_semaphore, #tpu.memory_space<semaphore_mem>>
        tpu.wait_dma2 semaphore(%39 : memref<!tpu.dma_semaphore, #tpu.memory_space<semaphore_mem>>) src(%36 : memref<1x128xf32, #tpu.memory_space<any>>) dst(%37 : memref<1x128xf32, #tpu.memory_space<any>>)
      } else {
      }
      %c0_i32_22 = arith.constant 0 : i32
      %33 = arith.cmpi slt, %19, %c0_i32_22 : i32
      %34 = arith.extui %33 : i1 to i32
      %c0_i32_23 = arith.constant 0 : i32
      %35 = arith.cmpi ne, %34, %c0_i32_23 : i32
      scf.if %35 {
        %c0_i32_24 = arith.constant 0 : i32
        %36 = tpu.memref_slice %arg4[%17, %c0_i32_24] : memref<8x128xf32, #tpu.memory_space<any>> -> memref<1x128xf32, #tpu.memory_space<any>>
        %37 = tpu.memref_slice %arg5[%29] : memref<16x!tpu.dma_semaphore, #tpu.memory_space<semaphore_mem>> -> memref<1x!tpu.dma_semaphore, #tpu.memory_space<semaphore_mem>>
        %38 = tpu.memref_squeeze %37 : memref<1x!tpu.dma_semaphore, #tpu.memory_space<semaphore_mem>> -> memref<!tpu.dma_semaphore, #tpu.memory_space<semaphore_mem>>
        tpu.wait_dma2 semaphore(%38 : memref<!tpu.dma_semaphore, #tpu.memory_space<semaphore_mem>>) src(%arg3 : memref<1x128xf32, #tpu.memory_space<any>>) dst(%36 : memref<1x128xf32, #tpu.memory_space<any>>)
      } else {
      }
    }
    return
  }
}

</mosaic_0001>

<bundles_post_ra>
// kernel: tpu_custom_call.1
= control target key start
LH: loop header
LB: loop body
LE: loop exit
PB: predicated region body
PF: predicated region fallthrough
CT: control target
= control target key end

     0   :  { %s364_s15 = smov [#allocation4]   ;;  %s432_s0 = inlined_call_operand.hbm [shape: s32[8], index: 0, kind: input, shape index: {}]   ;;  %s433_s1 = inlined_call_operand.hbm [shape: f32[16,128], index: 1, kind: input, shape index: {}]   ;;  %s434_s2 = inlined_call_operand.vmem [shape: f32[1,128], index: 2, kind: input, shape index: {}]   ;;  %s435_s3 = inlined_call_operand.hbm [shape: f32[8,128], index: 3, kind: output, shape index: {}]  }
   0x1   :  { %s9_s14 = sshll.u32 %s432_s0, 4  ;;  %s10_s14 = int_to_ptr.hbm [resolvable:$true] %s9_s14 }
   0x2   :  { %12 = dma.hbm_to_smem %s10_s14, 16, %s364_s15, [#allocation3] }
   0x3   :  { %346 = dma.done.wait [#allocation3], 16 }
   0x4   :  { %347 = vsyncadd [#allocation3], 4294967280 }
   0x5   :  { %15 = sfence }
   0x6   :  { %s390_s16 = smov 0  }
   0x7 LB: > { %s396_s17 = sld [smem:[#allocation4 + %s358_s16]]  ;;  %p28_p0 = scmp.lt.s32.totalorder %s358_s16, 0  ;;  %s358_s16 = sphi %s390_s16, %s23_s16  }
   0x8   : > { %s29_s0 = ssub.s32 0, %s358_s16  ;;  %s45_s20 = scalar_lea.hbm %s435_s3, %s358_s16 }
   0x9   : > { %s241_s21 = smin.u32 %s358_s16, %s29_s0  ;;  %s53_s22 = sshll.u32 %s45_s20, 4  ;;  %s405_s22 = int_to_ptr.hbm [resolvable:$true] %s53_s22 }
   0xa   : > { %s31_s23 = sand.u32 15, %s241_s21   ;;  %s71_s27 = sshll.u32 %s434_s2, 4  ;;  %s72_s27 = int_to_ptr.vmem [resolvable:$true] %s71_s27 }
   0xb   : > { %s32_s24 = ssub.s32 0, %s31_s23  ;;  %s365_s7 = smov [#allocation5]  }
   0xc   : > { %s437_s24 = smov (!%p28_p0, %s32_s24), %s31_s23  ;;  %s366_s8 = smov 0  }
   0xd   : > { %p275_p1 = scmp.ge.s32.totalorder %s396_s17, 0  ;;  %s44_s30 = scalar_lea.hbm %s433_s1, %s396_s17 }
   0xe   : > { %p243_p2 = scmp.lt.s32.totalorder %s437_s24, 0  ;;  %s38_s4 = sadd.s32 16, %s437_s24 }
   0xf   : > { %s51_s5 = sshll.u32 %s44_s30, 4  ;;  %p244_p3 = scmp.lt.s32.totalorder %s396_s17, 0  ;;  %s52_s5 = int_to_ptr.hbm [resolvable:$true] %s51_s5 }
  0x10   : > { %s439_s4 = smov (!%p243_p2, %s38_s4), %s437_s24  ;;  %s324_s9 = sshra.s32 %s405_s22, 4  ;;  %s325_s9 = int_to_ptr.hbm [resolvable:$true] %s324_s9 }
  0x11   : > { %s46_s6 = scalar_lea.sflag [#allocation2], %s439_s4  ;;  %s326_s10 = scalar_lea.hbm %s325_s9, 1 }
  0x12   : > { %268 = dma.general (%p275_p1), %s52_s5, 16, %s405_s22, %s46_s6, %s365_s7, [#allocation6], %s366_s8, 0  }
  0x13   : > { %p327_p4 = scmp.ne.s32.totalorder %s325_s9, %s326_s10  ;;  %s330_s13 = scalar_lea.hbm %s435_s3, 8 }
  0x14   : > { %p331_p7 = scmp.lt.s32.totalorder %s325_s9, %s435_s3  ;;  %p332_p8 = scmp.lt.s32.totalorder %s330_s13, %s326_s10 }
  0x15   : > { %p328_p5 = pnand %p327_p4, %p244_p3 }
  0x16   : > { %p333_p9 = por %p332_p8, %p331_p7 }
  0x17   : > { %p329_p6 = pneg %p328_p5 }
  0x19   : > { %p334_p10 = pnand %p333_p9, %p329_p6 }
  0x1b   : > { %337 = shalt.err (!%p334_p10)  }
  0x1c   : > { %270 = dma.vmem_to_hbm [thread:$0]  (%p244_p3), %s72_s27, 16, %s405_s22, %s46_s6 }
  0x1d   : > { %s23_s16 = sadd.s32 1, %s358_s16  }
  0x1e   : > { %p22_p11 = scmp.ge.s32.totalorder %s23_s16, 8 }
  0x1f   :  { %s360_s0 = smov (%p22_p11), 0  }
  0x20   :  { %25 = sbr.rel (!%p22_p11) target bundleno = 7 (0x7), region = 68 }
  0x25 LB: > { %s84_s18 = sld [smem:[#allocation4 + %s362_s0]]  ;;  %p85_p12 = scmp.lt.s32.totalorder %s362_s0, 0  ;;  %s362_s0 = sphi %s360_s0, %s80_s0  }
  0x26   : > { %s86_s19 = ssub.s32 0, %s362_s0 }
  0x27   : > { %s246_s20 = smin.u32 %s362_s0, %s86_s19 }
  0x28   : > { %s88_s21 = sand.u32 15, %s246_s20  }
  0x29   : > { %s89_s23 = ssub.s32 0, %s88_s21 }
  0x2a   : > { %s441_s23 = smov (!%p85_p12, %s89_s23), %s88_s21 }
  0x2b   : > { %p249_p13 = scmp.lt.s32.totalorder %s84_s18, 0  ;;  %p277_p0 = scmp.ge.s32.totalorder %s84_s18, 0 }
  0x2c   : > { %p248_p1 = scmp.lt.s32.totalorder %s441_s23, 0  ;;  %s95_s17 = sadd.s32 16, %s441_s23 }
  0x2e   : > { %s443_s17 = smov (!%p248_p1, %s95_s17), %s441_s23 }
  0x2f   : > { %s101_s22 = scalar_lea.sflag [#allocation2], %s443_s17 }
  0x30   : > { %349 = dma.done.wait (%p277_p0), %s101_s22, 16 }
  0x31   : > { %351 = vsyncadd (%p277_p0), %s101_s22, 4294967280 }
  0x32   : > { %353 = dma.done.wait (%p249_p13), %s101_s22, 16 }
  0x33   : > { %355 = vsyncadd (%p249_p13), %s101_s22, 4294967280  ;;  %s80_s0 = sadd.s32 1, %s362_s0  }
  0x34   : > { %p79_p2 = scmp.ge.s32.totalorder %s80_s0, 8 }
  0x36   :  { %82 = sbr.rel (!%p79_p2) target bundleno = 37 (0x25), region = 79 }
  0x3b   :  { %113 = vsyncmov [#allocation2] }
  0x3e   :  { %s114_s1 = vpop.sfrf %113 }
  0x3f   :  { %p251_p3 = scmp.ne.s32.totalorder %s114_s1, 0 }
  0x41   :  { %118 = shalt.err (%p251_p3)  }
  0x42   :  { %120 = vsyncmov [#allocation2 + $0x1] }
  0x45   :  { %s121_s2 = vpop.sfrf %120 }
  0x46   :  { %p252_p4 = scmp.ne.s32.totalorder %s121_s2, 0 }
  0x48   :  { %125 = shalt.err (%p252_p4)  }
  0x49   :  { %127 = vsyncmov [#allocation2 + $0x2] }
  0x4c   :  { %s128_s3 = vpop.sfrf %127 }
  0x4d   :  { %p253_p5 = scmp.ne.s32.totalorder %s128_s3, 0 }
  0x4f   :  { %132 = shalt.err (%p253_p5)  }
  0x50   :  { %134 = vsyncmov [#allocation2 + $0x3] }
  0x53   :  { %s135_s16 = vpop.sfrf %134 }
  0x54   :  { %p254_p6 = scmp.ne.s32.totalorder %s135_s16, 0 }
  0x56   :  { %139 = shalt.err (%p254_p6)  }
  0x57   :  { %141 = vsyncmov [#allocation2 + $0x4] }
  0x5a   :  { %s142_s24 = vpop.sfrf %141 }
  0x5b   :  { %p255_p7 = scmp.ne.s32.totalorder %s142_s24, 0 }
  0x5d   :  { %146 = shalt.err (%p255_p7)  }
  0x5e   :  { %148 = vsyncmov [#allocation2 + $0x5] }
  0x61   :  { %s149_s25 = vpop.sfrf %148 }
  0x62   :  { %p256_p8 = scmp.ne.s32.totalorder %s149_s25, 0 }
  0x64   :  { %153 = shalt.err (%p256_p8)  }
  0x65   :  { %155 = vsyncmov [#allocation2 + $0x6] }
  0x68   :  { %s156_s26 = vpop.sfrf %155 }
  0x69   :  { %p257_p9 = scmp.ne.s32.totalorder %s156_s26, 0 }
  0x6b   :  { %160 = shalt.err (%p257_p9)  }
  0x6c   :  { %162 = vsyncmov [#allocation2 + $0x7] }
  0x6f   :  { %s163_s27 = vpop.sfrf %162 }
  0x70   :  { %p258_p10 = scmp.ne.s32.totalorder %s163_s27, 0 }
  0x72   :  { %167 = shalt.err (%p258_p10)  }
  0x73   :  { %169 = vsyncmov [#allocation2 + $0x8] }
  0x76   :  { %s170_s28 = vpop.sfrf %169 }
  0x77   :  { %p259_p11 = scmp.ne.s32.totalorder %s170_s28, 0 }
  0x79   :  { %174 = shalt.err (%p259_p11)  }
  0x7a   :  { %176 = vsyncmov [#allocation2 + $0x9] }
  0x7d   :  { %s177_s29 = vpop.sfrf %176 }
  0x7e   :  { %p260_p12 = scmp.ne.s32.totalorder %s177_s29, 0 }
  0x80   :  { %181 = shalt.err (%p260_p12)  }
  0x81   :  { %183 = vsyncmov [#allocation2 + $0xa] }
  0x84   :  { %s184_s30 = vpop.sfrf %183 }
  0x85   :  { %p261_p13 = scmp.ne.s32.totalorder %s184_s30, 0 }
  0x87   :  { %188 = shalt.err (%p261_p13)  }
  0x88   :  { %190 = vsyncmov [#allocation2 + $0xb] }
  0x8b   :  { %s191_s4 = vpop.sfrf %190 }
  0x8c   :  { %p262_p0 = scmp.ne.s32.totalorder %s191_s4, 0 }
  0x8e   :  { %195 = shalt.err (%p262_p0)  }
  0x8f   :  { %197 = vsyncmov [#allocation2 + $0xc] }
  0x92   :  { %s198_s5 = vpop.sfrf %197 }
  0x93   :  { %p263_p1 = scmp.ne.s32.totalorder %s198_s5, 0 }
  0x95   :  { %202 = shalt.err (%p263_p1)  }
  0x96   :  { %204 = vsyncmov [#allocation2 + $0xd] }
  0x99   :  { %s205_s6 = vpop.sfrf %204 }
  0x9a   :  { %p264_p2 = scmp.ne.s32.totalorder %s205_s6, 0 }
  0x9c   :  { %209 = shalt.err (%p264_p2)  }
  0x9d   :  { %211 = vsyncmov [#allocation2 + $0xe] }
  0xa0   :  { %s212_s7 = vpop.sfrf %211 }
  0xa1   :  { %p265_p3 = scmp.ne.s32.totalorder %s212_s7, 0 }
  0xa3   :  { %216 = shalt.err (%p265_p3)  }
  0xa4   :  { %218 = vsyncmov [#allocation2 + $0xf] }
  0xa7   :  { %s219_s8 = vpop.sfrf %218 }
  0xa8   :  { %p266_p4 = scmp.ne.s32.totalorder %s219_s8, 0 }
  0xaa   :  { %223 = shalt.err (%p266_p4)  }

</bundles_post_ra>
